<compile_context>
chip_gen: v5e
topology: v5e:2x2
jax: 0.10.0
libtpu: 0.0.40
codegen_flags: <defaults>
</compile_context>

<pallas_src>
import functools

import jax
import jax.numpy as jnp
from jax.experimental import pallas as pl
from jax.experimental.pallas import tpu as pltpu

EPS = 1e-5
HIDDEN_PAD = 128   # lane-dense output width for the second matmul


def linear1_stats_kernel(x_ref, w1_ref, b1_ref, h_ref, stats_ref, *, tn, n_valid):
    """h = x@W1 + b1 ; accumulate sum(h), sum(h^2) over valid rows across the grid."""
    i = pl.program_id(0)

    # bf16 x bf16 -> f32 accumulate on the MXU.
    h = jnp.dot(x_ref[...], w1_ref[...], preferred_element_type=jnp.float32)
    h = h + b1_ref[...]
    h_ref[...] = h

    # Mask rows that belong to batch padding so BN stats stay exact.
    row = i * tn + jax.lax.broadcasted_iota(jnp.int32, (tn, 1), 0)
    valid = row < n_valid
    hm = jnp.where(valid, h, 0.0)

    s = jnp.sum(hm, axis=0, keepdims=True)            # (1, 128)
    ss = jnp.sum(hm * hm, axis=0, keepdims=True)      # (1, 128)
    pad = jnp.zeros((stats_ref.shape[0] - 2, s.shape[1]), jnp.float32)
    upd = jnp.concatenate([s, ss, pad], axis=0)       # (8, 128)

    @pl.when(i == 0)
    def _():
        stats_ref[...] = jnp.zeros_like(stats_ref)

    stats_ref[...] += upd


def bn_relu_linear2_kernel(h_ref, scale_ref, shift_ref, w2_ref, b2_ref, o_ref):
    """Fused BN (single FMA) -> ReLU -> lane-dense second matmul."""
    r = jnp.maximum(h_ref[...] * scale_ref[...] + shift_ref[...], 0.0)
    o_ref[...] = jnp.dot(r, w2_ref[...], preferred_element_type=jnp.float32) + b2_ref[...]


def mlp_forward(x_nchw, w1, b1, gamma, beta, w2, b2, *, tn=512):
    n = x_nchw.shape[0]
    x_flat = x_nchw.reshape(n, -1).astype(jnp.float32)        # Flatten (layout glue)
    d_in = x_flat.shape[1]                                     # 784
    d_h = w1.shape[1]                                          # 128
    d_out = w2.shape[1]                                        # 10

    # Row-tile: multiple of 8, capped by requested tn; pad batch to a multiple.
    tn_eff = min(tn, max(8, ((n + 7) // 8) * 8))
    n_pad = ((n + tn_eff - 1) // tn_eff) * tn_eff
    grid_n = n_pad // tn_eff

    # bf16 operands for the first (dominant) matmul; bias stays f32.
    x_p = jnp.zeros((n_pad, d_in), jnp.bfloat16).at[:n].set(x_flat.astype(jnp.bfloat16))
    w1_bf = w1.astype(jnp.bfloat16)
    b1_r = b1.reshape(1, d_h).astype(jnp.float32)

    cparams = pltpu.CompilerParams(
        dimension_semantics=("arbitrary",),          # stats accumulator across tiles
        vmem_limit_bytes=32 * 1024 * 1024,
    )

    k1 = functools.partial(linear1_stats_kernel, tn=tn_eff, n_valid=n)
    h, stats = pl.pallas_call(
        k1,
        out_shape=(
            jax.ShapeDtypeStruct((n_pad, d_h), jnp.float32),
            jax.ShapeDtypeStruct((8, d_h), jnp.float32),
        ),
        grid=(grid_n,),
        in_specs=[
            pl.BlockSpec((tn_eff, d_in), lambda i: (i, 0)),    # x tile (streamed)
            pl.BlockSpec((d_in, d_h), lambda i: (0, 0)),       # W1 (resident)
            pl.BlockSpec((1, d_h), lambda i: (0, 0)),          # b1 (resident)
        ],
        out_specs=(
            pl.BlockSpec((tn_eff, d_h), lambda i: (i, 0)),     # h tile (streamed)
            pl.BlockSpec((8, d_h), lambda i: (0, 0)),          # stats accumulator
        ),
        compiler_params=cparams,
        cost_estimate=pl.CostEstimate(
            flops=2 * n_pad * d_in * d_h + 6 * n_pad * d_h,
            transcendentals=0,
            bytes_accessed=n_pad * d_in * 2 + d_in * d_h * 2 + n_pad * d_h * 4,
        ),
    )(x_p, w1_bf, b1_r)

    # BatchNorm (training-mode) folded into one scale/shift pair (tiny JAX glue).
    mean = stats[0] / n
    var = stats[1] / n - mean * mean                 # biased variance
    inv = jax.lax.rsqrt(var + EPS)
    scale = (gamma * inv).reshape(1, d_h).astype(jnp.float32)
    shift = (beta - mean * gamma * inv).reshape(1, d_h).astype(jnp.float32)

    # Zero-pad W2/b2 to a lane-dense 128-wide output.
    w2_p = jnp.zeros((d_h, HIDDEN_PAD), jnp.float32).at[:, :d_out].set(w2.astype(jnp.float32))
    b2_p = jnp.zeros((1, HIDDEN_PAD), jnp.float32).at[:, :d_out].set(
        b2.reshape(1, -1).astype(jnp.float32))

    out_p = pl.pallas_call(
        bn_relu_linear2_kernel,
        out_shape=jax.ShapeDtypeStruct((n_pad, HIDDEN_PAD), jnp.float32),
        grid=(grid_n,),
        in_specs=[
            pl.BlockSpec((tn_eff, d_h), lambda i: (i, 0)),     # h tile (streamed)
            pl.BlockSpec((1, d_h), lambda i: (0, 0)),          # BN scale (resident)
            pl.BlockSpec((1, d_h), lambda i: (0, 0)),          # BN shift (resident)
            pl.BlockSpec((d_h, HIDDEN_PAD), lambda i: (0, 0)), # W2 padded (resident)
            pl.BlockSpec((1, HIDDEN_PAD), lambda i: (0, 0)),   # b2 padded (resident)
        ],
        out_specs=pl.BlockSpec((tn_eff, HIDDEN_PAD), lambda i: (i, 0)),
        compiler_params=pltpu.CompilerParams(
            dimension_semantics=("parallel",),       # tiles independent -> megacore OK
            vmem_limit_bytes=32 * 1024 * 1024,
        ),
        cost_estimate=pl.CostEstimate(
            flops=2 * n_pad * d_h * HIDDEN_PAD + 3 * n_pad * d_h,
            transcendentals=0,
            bytes_accessed=n_pad * d_h * 4 + d_h * HIDDEN_PAD * 4 + n_pad * HIDDEN_PAD * 4,
        ),
    )(h, scale, shift, w2_p, b2_p)

    return out_p[:n, :d_out]


def init_params(key):
    k1, k2, k3, k4 = jax.random.split(key, 4)
    # PyTorch-style Linear init: U(-1/sqrt(fan_in), 1/sqrt(fan_in))
    bound1 = 1.0 / jnp.sqrt(784.0)
    w1 = jax.random.uniform(k1, (784, 128), jnp.float32, -bound1, bound1)
    b1 = jax.random.uniform(k2, (128,), jnp.float32, -bound1, bound1)
    gamma = jnp.ones((128,), jnp.float32)   # BatchNorm1d weight
    beta = jnp.zeros((128,), jnp.float32)   # BatchNorm1d bias
    bound2 = 1.0 / jnp.sqrt(128.0)
    w2 = jax.random.uniform(k3, (128, 10), jnp.float32, -bound2, bound2)
    b2 = jax.random.uniform(k4, (10,), jnp.float32, -bound2, bound2)
    return w1, b1, gamma, beta, w2, b2


def ref_forward(x, w1, b1, gamma, beta, w2, b2):
    """Pure-JAX reference with the same bf16 cast on the first matmul."""
    xf = x.reshape(x.shape[0], -1)
    h = (xf.astype(jnp.bfloat16).astype(jnp.float32)
         @ w1.astype(jnp.bfloat16).astype(jnp.float32)) + b1
    m = h.mean(0, keepdims=True)
    v = ((h - m) ** 2).mean(0, keepdims=True)
    r = jnp.maximum((h - m) * jax.lax.rsqrt(v + EPS) * gamma + beta, 0.0)
    return r @ w2 + b2


if __name__ == "__main__":
    key = jax.random.PRNGKey(0)
    pkey, xkey = jax.random.split(key)
    params = init_params(pkey)

    # Small MNIST-like input consistent with Flatten -> Linear(784, ...)
    x = jax.random.normal(xkey, (2, 1, 28, 28), dtype=jnp.float32)
    out = jax.block_until_ready(mlp_forward(x, *params))
    assert out.shape == (2, 10), out.shape
    ref = ref_forward(x, *params)
    assert jnp.allclose(out, ref, atol=5e-3, rtol=5e-3), float(jnp.max(jnp.abs(out - ref)))

    # Multi-tile path: exercises cross-tile BN stat accumulation + padded-row masking.
    x2 = jax.random.normal(jax.random.PRNGKey(1), (20, 1, 28, 28), dtype=jnp.float32)
    out2 = jax.block_until_ready(mlp_forward(x2, *params, tn=8))
    assert out2.shape == (20, 10), out2.shape
    ref2 = ref_forward(x2, *params)
    assert jnp.allclose(out2, ref2, atol=5e-3, rtol=5e-3), float(jnp.max(jnp.abs(out2 - ref2)))

    print("KERNEL_OK")
</pallas_src>

<mosaic_0001>
module attributes {stable_mosaic.version = 11 : i64} {
  func.func @linear1_stats_kernel(%arg0: i32, %arg1: memref<8x784xbf16, #tpu.memory_space<vmem>>, %arg2: memref<784x128xbf16, #tpu.memory_space<vmem>>, %arg3: memref<1x128xf32, #tpu.memory_space<vmem>>, %arg4: memref<8x128xf32, #tpu.memory_space<vmem>>, %arg5: memref<8x128xf32, #tpu.memory_space<vmem>>) attributes {dimension_semantics = [#tpu.dimension_semantics<arbitrary>], iteration_bounds = array<i64: 1>, scalar_prefetch = 0 : i64, scratch_operands = 0 : i64, tpu.core_type = #tpu.core_type<tc>, window_params = [{transform_indices = @transform_0, window_bounds = array<i64: 8, 784>}, {pipeline_mode = #tpu.pipeline_mode<synchronous>, transform_indices = @transform_1, window_bounds = array<i64: 784, 128>}, {pipeline_mode = #tpu.pipeline_mode<synchronous>, transform_indices = @transform_2, window_bounds = array<i64: 1, 128>}, {transform_indices = @transform_3, window_bounds = array<i64: 8, 128>}, {pipeline_mode = #tpu.pipeline_mode<synchronous>, transform_indices = @transform_4, window_bounds = array<i64: 8, 128>}]} {
    %c0 = arith.constant 0 : index
    %c0_0 = arith.constant 0 : index
    %0 = vector.load %arg1[%c0, %c0_0] : memref<8x784xbf16, #tpu.memory_space<vmem>>, vector<8x784xbf16>
    %c0_1 = arith.constant 0 : index
    %c0_2 = arith.constant 0 : index
    %1 = vector.load %arg2[%c0_1, %c0_2] : memref<784x128xbf16, #tpu.memory_space<vmem>>, vector<784x128xbf16>
    %cst = arith.constant dense<0.000000e+00> : vector<8x128xf32>
    %2 = tpu.matmul %0, %1, %cst {dimension_numbers = #tpu.dot_dimension_numbers<[1], [0], [0], [1], [0, 0, 1, 1], [], []>} : vector<8x784xbf16>, vector<784x128xbf16>, vector<8x128xf32> -> vector<8x128xf32>
    %c0_3 = arith.constant 0 : index
    %c0_4 = arith.constant 0 : index
    %3 = vector.load %arg3[%c0_3, %c0_4] : memref<1x128xf32, #tpu.memory_space<vmem>>, vector<1x128xf32>
    %4 = vector.broadcast %3 : vector<1x128xf32> to vector<8x128xf32>
    %5 = arith.addf %2, %4 : vector<8x128xf32>
    %c0_5 = arith.constant 0 : index
    %c0_6 = arith.constant 0 : index
    %6 = vector.load %arg4[%c0_5, %c0_6] : memref<8x128xf32, #tpu.memory_space<vmem>>, vector<8x128xf32>
    tpu.vector_store %arg4[%c0_5, %c0_6], %5 {strides = array<i32>} : memref<8x128xf32, #tpu.memory_space<vmem>>, vector<8x128xf32>,
    %c8_i32 = arith.constant 8 : i32
    %7 = arith.muli %arg0, %c8_i32 : i32
    %8 = tpu.iota {dimensions = array<i32: 0>} : vector<8x1xi32>
    %9 = vector.broadcast %7 : i32 to vector<8x1xi32>
    %10 = arith.addi %9, %8 : vector<8x1xi32>
    %c2_i32 = arith.constant 2 : i32
    %11 = vector.broadcast %c2_i32 : i32 to vector<8x1xi32>
    %12 = arith.cmpi slt, %10, %11 : vector<8x1xi32>
    %cst_7 = arith.constant 0.000000e+00 : f32
    %13 = vector.shape_cast %12 : vector<8x1xi1> to vector<8x1xi1>
    %14 = vector.broadcast %13 : vector<8x1xi1> to vector<8x128xi1>
    %15 = vector.broadcast %cst_7 : f32 to vector<8x128xf32>
    %16 = arith.select %14, %5, %15 : vector<8x128xi1>, vector<8x128xf32>
    %cst_8 = arith.constant dense<0.000000e+00> : vector<128xf32>
    %17 = vector.multi_reduction <add>, %16, %cst_8 [0] : vector<8x128xf32> to vector<128xf32>
    %18 = vector.shape_cast %17 : vector<128xf32> to vector<1x128xf32>
    %19 = arith.mulf %16, %16 : vector<8x128xf32>
    %cst_9 = arith.constant dense<0.000000e+00> : vector<128xf32>
    %20 = vector.multi_reduction <add>, %19, %cst_9 [0] : vector<8x128xf32> to vector<128xf32>
    %21 = vector.shape_cast %20 : vector<128xf32> to vector<1x128xf32>
    %cst_10 = arith.constant 0.000000e+00 : f32
    %22 = vector.broadcast %cst_10 : f32 to vector<6x128xf32>
    %23 = tpu.concatenate %18, %21, %22 in 0 : vector<1x128xf32>, vector<1x128xf32>, vector<6x128xf32> -> vector<8x128xf32>
    %c0_i32 = arith.constant 0 : i32
    %24 = arith.cmpi eq, %arg0, %c0_i32 : i32
    %25 = arith.extui %24 : i1 to i32
    %c0_i32_11 = arith.constant 0 : i32
    %26 = arith.cmpi ne, %25, %c0_i32_11 : i32
    scf.if %26 {
      %cst_16 = arith.constant 0.000000e+00 : f32
      %30 = vector.broadcast %cst_16 : f32 to vector<8x128xf32>
      %c0_17 = arith.constant 0 : index
      %c0_18 = arith.constant 0 : index
      %31 = vector.load %arg5[%c0_17, %c0_18] : memref<8x128xf32, #tpu.memory_space<vmem>>, vector<8x128xf32>
      tpu.vector_store %arg5[%c0_17, %c0_18], %30 {strides = array<i32>} : memref<8x128xf32, #tpu.memory_space<vmem>>, vector<8x128xf32>,
    } else {
    }
    %c0_12 = arith.constant 0 : index
    %c0_13 = arith.constant 0 : index
    %27 = vector.load %arg5[%c0_12, %c0_13] : memref<8x128xf32, #tpu.memory_space<vmem>>, vector<8x128xf32>
    %28 = arith.addf %27, %23 : vector<8x128xf32>
    %c0_14 = arith.constant 0 : index
    %c0_15 = arith.constant 0 : index
    %29 = vector.load %arg5[%c0_14, %c0_15] : memref<8x128xf32, #tpu.memory_space<vmem>>, vector<8x128xf32>
    tpu.vector_store %arg5[%c0_14, %c0_15], %28 {strides = array<i32>} : memref<8x128xf32, #tpu.memory_space<vmem>>, vector<8x128xf32>,
    return
  }
  func.func @transform_0(%arg0: i32) -> (i32, i32) {
    %c0_i32 = arith.constant 0 : i32
    %c0_i32_0 = arith.constant 0 : i32
    return %arg0, %c0_i32 : i32, i32
  }
  func.func @transform_1(%arg0: i32) -> (i32, i32) {
    %c0_i32 = arith.constant 0 : i32
    %c0_i32_0 = arith.constant 0 : i32
    %c0_i32_1 = arith.constant 0 : i32
    return %c0_i32, %c0_i32_0 : i32, i32
  }
  func.func @transform_2(%arg0: i32) -> (i32, i32) {
    %c0_i32 = arith.constant 0 : i32
    %c0_i32_0 = arith.constant 0 : i32
    %c0_i32_1 = arith.constant 0 : i32
    return %c0_i32, %c0_i32_0 : i32, i32
  }
  func.func @transform_3(%arg0: i32) -> (i32, i32) {
    %c0_i32 = arith.constant 0 : i32
    %c0_i32_0 = arith.constant 0 : i32
    return %arg0, %c0_i32 : i32, i32
  }
  func.func @transform_4(%arg0: i32) -> (i32, i32) {
    %c0_i32 = arith.constant 0 : i32
    %c0_i32_0 = arith.constant 0 : i32
    %c0_i32_1 = arith.constant 0 : i32
    return %c0_i32, %c0_i32_0 : i32, i32
  }
}

</mosaic_0001>

<bundles_post_ra>
// kernel: tpu_custom_call.1
= control target key start
LH: loop header
LB: loop body
LE: loop exit
PB: predicated region body
PF: predicated region fallthrough
CT: control target
= control target key end

     0   :  { %10 = vsyncpa [#allocation3], 0  ;;  %s1041_s0 = inlined_call_operand.hbm [shape: bf16[8,784], index: 0, kind: input, shape index: {}]   ;;  %s1042_s1 = inlined_call_operand.hbm [shape: bf16[784,128], index: 1, kind: input, shape index: {}]   ;;  %s1043_s2 = inlined_call_operand.vmem [shape: f32[1,128], index: 2, kind: input, shape index: {}]   ;;  %s1044_s3 = inlined_call_operand.hbm [shape: f32[8,128], index: 3, kind: output, shape index: {0}]   ;;  %s1045_s4 = inlined_call_operand.hbm [shape: f32[8,128], index: 4, kind: output, shape index: {1}]  }
   0x1   :  { %11 = vsyncpa [#allocation6], 0 }
   0x2   :  { %12 = vsyncpa [#allocation4], 0 }
   0x3   :  { %13 = vsyncpa [#allocation9], 0  ;;  %s19_s17 = sshll.u32 %s1041_s0, 4  ;;  %s995_s18 = smov [#allocation2]   ;;  %s20_s17 = int_to_ptr.hbm [resolvable:$true] %s19_s17 }
   0x4   :  { %s21_s19 = sshll.u32 %s995_s18, 4  ;;  %s29_s22 = sshll.u32 %s1042_s1, 4  ;;  %s22_s19 = int_to_ptr.vmem [resolvable:$true] %s21_s19  ;;  %s30_s22 = int_to_ptr.hbm [resolvable:$true] %s29_s22 }
   0x5   :  { %24 = dma.hbm_to_vmem [thread:$0]  %s20_s17, 448, %s22_s19, [#allocation3]  }
   0x6   :  { %s996_s23 = smov [#allocation5]   ;;  %s997_s25 = smov 64  }
   0x7   :  { %s31_s24 = sshll.u32 %s996_s23, 4  ;;  %s998_s26 = smov 4   ;;  %s32_s24 = int_to_ptr.vmem [resolvable:$true] %s31_s24 }
   0x8   :  { %37 = dma.hbm_to_vmem [thread:$0]  %s30_s22, 6272, %s32_s24, [#allocation6], %s997_s25, %s997_s25, %s998_s26  }
   0x9   :  { %987 = dma.done.wait [#allocation3], 448  }
   0xa   :  { %988 = vsyncadd [#allocation3], 4294966848 }
   0xb   :  { %989 = dma.done.wait [#allocation6], 6272  }
   0xc   :  { %990 = vsyncadd [#allocation6], 4294961024  ;;  %v841_v0 = vld [vmem:[#allocation5 + $0x38] sm:$0xff]  ;;  %v840_v3 = vld [vmem:[#allocation5 + $0x30] sm:$0xff]  ;;  %vm473_vm0 = vcmask 130048   ;;  %s999_s27 = smov [#allocation7]  }
   0xd   :  { %v849_v1 = vld [vmem:[#allocation5 + $0x78] sm:$0xff]  ;;  %477 = vmatpush.bf16.msra.mxu0 %v841_v0  ;;  %v848_v4 = vld [vmem:[#allocation5 + $0x70] sm:$0xff]  ;;  %v839_v8 = vld [vmem:[#allocation5 + $0x28] sm:$0xff]  ;;  %s608_s28 = sshll.u32 %s999_s27, 4  ;;  %s610_s5 = sshll.u32 %s1044_s3, 4  ;;  %vm591_vm2 = vcmask 1040384   ;;  %s609_s28 = int_to_ptr.vmem [resolvable:$true] %s608_s28  ;;  %s611_s5 = int_to_ptr.hbm [resolvable:$true] %s610_s5 }
   0xe   :  { %v857_v2 = vld [vmem:[#allocation5 + $0xb8] sm:$0xff]  ;;  %490 = vmatpush.bf16.msra.mxu1 %v849_v1  ;;  %v856_v5 = vld [vmem:[#allocation5 + $0xb0] sm:$0xff]  ;;  %v847_v9 = vld [vmem:[#allocation5 + $0x68] sm:$0xff]  ;;  %vm593_vm3 = vcmask 1041408   ;;  %s621_s8 = sshll.u32 %s1045_s4, 4  ;;  %s622_s8 = int_to_ptr.hbm [resolvable:$true] %s621_s8 }
   0xf   :  { %503 = vmatpush.bf16.msra.mxu2 %v857_v2  ;;  %v865_v6 = vld [vmem:[#allocation5 + $0xf8] sm:$0xff]  ;;  %v864_v7 = vld [vmem:[#allocation5 + $0xf0] sm:$0xff]  ;;  %v855_v10 = vld [vmem:[#allocation5 + $0xa8] sm:$0xff] }
  0x10   :  { %516 = vmatpush.bf16.msra.mxu3 %v865_v6  ;;  %v863_v11 = vld [vmem:[#allocation5 + $0xe8] sm:$0xff]  ;;  %v838_v12 = vld [vmem:[#allocation5 + $0x20] sm:$0xff]  ;;  %v837_v16 = vld [vmem:[#allocation5 + $0x18] sm:$0xff] }
  0x11   :  { %478 = vmatpush.bf16.msra.mxu0 %v840_v3  ;;  %v846_v13 = vld [vmem:[#allocation5 + $0x60] sm:$0xff]  ;;  %v845_v17 = vld [vmem:[#allocation5 + $0x58] sm:$0xff]  ;;  %v836_v20 = vld [vmem:[#allocation5 + $0x10] sm:$0xff] }
  0x12   :  { %491 = vmatpush.bf16.msra.mxu1 %v848_v4  ;;  %v854_v14 = vld [vmem:[#allocation5 + $0xa0] sm:$0xff]  ;;  %v853_v18 = vld [vmem:[#allocation5 + $0x98] sm:$0xff]  ;;  %v844_v21 = vld [vmem:[#allocation5 + $0x50] sm:$0xff] }
  0x13   :  { %504 = vmatpush.bf16.msra.mxu2 %v856_v5  ;;  %v862_v15 = vld [vmem:[#allocation5 + $0xe0] sm:$0xff]  ;;  %v861_v19 = vld [vmem:[#allocation5 + $0xd8] sm:$0xff]  ;;  %v852_v22 = vld [vmem:[#allocation5 + $0x90] sm:$0xff] }
  0x14   :  { %517 = vmatpush.bf16.msra.mxu3 %v864_v7  ;;  %v860_v23 = vld [vmem:[#allocation5 + $0xd0] sm:$0xff]  ;;  %v835_v24 = vld [vmem:[#allocation5 + $0x8] sm:$0xff]  ;;  %v834_v32 = vld [vmem:[#allocation5] sm:$0xff] }
  0x15   :  { %479 = vmatpush.bf16.msra.mxu0 %v839_v8  ;;  %v843_v25 = vld [vmem:[#allocation5 + $0x48] sm:$0xff]  ;;  %v842_v33 = vld [vmem:[#allocation5 + $0x40] sm:$0xff]  ;;  %v873_v34 = vld [vmem:[#allocation5 + $0x138] sm:$0xff] }
  0x16   :  { %492 = vmatpush.bf16.msra.mxu1 %v847_v9  ;;  %v49_v26 = vld [vmem:[#allocation2] sm:$0xff]  ;;  %v50_v28 = vld [vmem:[#allocation2 + $0x8] sm:$0xff]  ;;  %v881_v35 = vld [vmem:[#allocation5 + $0x178] sm:$0xff] }
  0x17   :  { %505 = vmatpush.bf16.msra.mxu2 %v855_v10  ;;  %v851_v27 = vld [vmem:[#allocation5 + $0x88] sm:$0xff]  ;;  %v159_v29 = vunpack.c.l.b16 %v49_v26  ;;  %v160_v31 = vunpack.c.h.b16 %v49_v26  ;;  %v850_v36 = vld [vmem:[#allocation5 + $0x80] sm:$0xff]  ;;  %v161_v37 = vunpack.c.l.b16 %v50_v28  ;;  %v162_v40 = vunpack.c.h.b16 %v50_v28  ;;  %v872_v43 = vld [vmem:[#allocation5 + $0x130] sm:$0xff] }
  0x18   :  { %518 = vmatpush.bf16.msra.mxu3 %v863_v11  ;;  %v859_v30 = vld [vmem:[#allocation5 + $0xc8] sm:$0xff]  ;;  %v858_v41 = vld [vmem:[#allocation5 + $0xc0] sm:$0xff]  ;;  %v880_v44 = vld [vmem:[#allocation5 + $0x170] sm:$0xff] }
  0x19   :  { %480 = vmatpush.bf16.msra.mxu0 %v838_v12  ;;  %v166_v38 = vpack.c.b16 %v159_v29, %v159_v29  ;;  %v167_v39 = vpack.c.b16 %v160_v31, %v160_v31  ;;  %v882_v42 = vld [vmem:[#allocation5 + $0x180] sm:$0xff]  ;;  %v168_v45 = vpack.c.b16 %v161_v37, %v161_v37  ;;  %v169_v46 = vpack.c.b16 %v162_v40, %v162_v40  ;;  %v871_v47 = vld [vmem:[#allocation5 + $0x128] sm:$0xff]  ;;  %v52_v51 = vld [vmem:[#allocation2 + $0x18] sm:$0xf] }
  0x1a   :  { %493 = vmatpush.bf16.msra.mxu1 %v846_v13  ;;  %v879_v48 = vld [vmem:[#allocation5 + $0x168] sm:$0xff]  ;;  %v870_v49 = vld [vmem:[#allocation5 + $0x120] sm:$0xff]  ;;  %v869_v52 = vld [vmem:[#allocation5 + $0x118] sm:$0xff]  ;;  %v165_v54 = vunpack.c.l.b16 %v52_v51 }
  0x1b   :  { %506 = vmatpush.bf16.msra.mxu2 %v854_v14  ;;  %v878_v50 = vld [vmem:[#allocation5 + $0x160] sm:$0xff]  ;;  %v877_v53 = vld [vmem:[#allocation5 + $0x158] sm:$0xff]  ;;  %v868_v55 = vld [vmem:[#allocation5 + $0x110] sm:$0xff] }
  0x1c   :  { %519 = vmatpush.bf16.msra.mxu3 %v862_v15  ;;  %v876_v56 = vld [vmem:[#allocation5 + $0x150] sm:$0xff]  ;;  %v172_v57 = vpack.c.b16 %v165_v54, %v165_v54  ;;  %v867_v58 = vld [vmem:[#allocation5 + $0x108] sm:$0xff]  ;;  %v866_v63 = vld [vmem:[#allocation5 + $0x100] sm:$0xff] }
  0x1d   :  { %481 = vmatpush.bf16.msra.mxu0 %v837_v16  ;;  %v875_v59 = vld [vmem:[#allocation5 + $0x148] sm:$0xff]  ;;  %v51_v60 = vld [vmem:[#allocation2 + $0x10] sm:$0xff]  ;;  %v874_v0 = vld [vmem:[#allocation5 + $0x140] sm:$0xff]  ;;  %v570_v16 = vlaneseq }
  0x1e   :  { %494 = vmatpush.bf16.msra.mxu1 %v845_v17  ;;  %v163_v61 = vunpack.c.l.b16 %v51_v60  ;;  %v164_v62 = vunpack.c.h.b16 %v51_v60  ;;  %v890_v9 = vld [vmem:[%s1043_s2] ss:$0 sm:$0xff]  ;;  %s1000_s2 = smov [#allocation8]  }
  0x1f   :  { %507 = vmatpush.bf16.msra.mxu2 %v853_v18  ;;  %s619_s3 = sshll.u32 %s1000_s2, 4  ;;  %s620_s3 = int_to_ptr.vmem [resolvable:$true] %s619_s3 }
  0x20   :  { %520 = vmatpush.bf16.msra.mxu3 %v861_v19  ;;  %v170_v1 = vpack.c.b16 %v163_v61, %v163_v61  ;;  %v171_v2 = vpack.c.b16 %v164_v62, %v164_v62 }
  0x21   :  { %482 = vmatpush.bf16.msra.mxu0 %v836_v20  ;;  %v571_v20 = vshrl.u32 %v570_v16, 7 }
  0x22   :  { %495 = vmatpush.bf16.msra.mxu1 %v844_v21 }
  0x23   :  { %508 = vmatpush.bf16.msra.mxu2 %v852_v22  ;;  %vm574_vm1 = vcmp.lt.s32.totalorder %v571_v20, 2 }
  0x24   :  { %521 = vmatpush.bf16.msra.mxu3 %v860_v23 }
  0x25   :  { %483 = vmatpush.bf16.msra.mxu0 %v835_v24 }
  0x26   :  { %496 = vmatpush.bf16.msra.mxu1 %v843_v25 }
  0x27   :  { %509 = vmatpush.bf16.msra.mxu2 %v851_v27 }
  0x28   :  { %522 = vmatpush.bf16.msra.mxu3 %v859_v30 }
  0x29   :  { %484 = vmatpush.bf16.msra.mxu0 %v834_v32 }
  0x2a   :  { %497 = vmatpush.bf16.msra.mxu1 %v842_v33 }
  0x2b   :  { %510 = vmatpush.bf16.msra.mxu2 %v850_v36 }
  0x2c   :  { %485 = vmatmul.bf16.vlgmr.msra.gmra.mxu0 %v166_v38  ;;  %523 = vmatpush.bf16.msra.mxu3 %v858_v41 }
  0x2d   :  { %529 = vmatpush.bf16.msrb.mxu0 %v873_v34  ;;  %498 = vmatmul.bf16.vlgmr.msra.gmra.mxu1 %v167_v39 }
  0x2e   :  { %542 = vmatpush.bf16.msrb.mxu1 %v881_v35  ;;  %511 = vmatmul.bf16.vlgmr.msra.gmra.mxu2 %v168_v45 }
  0x2f   :  { %562 = vmatpush.bf16.msrb.mxu2 %v882_v42  ;;  %524 = vmatmul.bf16.vlgmr.msra.gmra.mxu3 %v169_v46 }
  0x31   :  { %530 = vmatpush.bf16.msrb.mxu0 %v872_v43 }
  0x32   :  { %543 = vmatpush.bf16.msrb.mxu1 %v880_v44 }
  0x35   :  { %531 = vmatpush.bf16.msrb.mxu0 %v871_v47 }
  0x36   :  { %544 = vmatpush.bf16.msrb.mxu1 %v879_v48 }
  0x39   :  { %532 = vmatpush.bf16.msrb.mxu0 %v870_v49 }
  0x3a   :  { %545 = vmatpush.bf16.msrb.mxu1 %v878_v50 }
  0x3d   :  { %533 = vmatpush.bf16.msrb.mxu0 %v869_v52 }
  0x3e   :  { %546 = vmatpush.bf16.msrb.mxu1 %v877_v53  ;;  %833 = vmatmul.msk.bf16.vlgmr.msrb.gmra.mxu2 %vm473_vm0, %v172_v57 }
  0x41   :  { %534 = vmatpush.bf16.msrb.mxu0 %v868_v55 }
  0x42   :  { %547 = vmatpush.bf16.msrb.mxu1 %v876_v56 }
  0x45   :  { %535 = vmatpush.bf16.msrb.mxu0 %v867_v58 }
  0x46   :  { %548 = vmatpush.bf16.msrb.mxu1 %v875_v59 }
  0x49   :  { %536 = vmatpush.bf16.msrb.mxu0 %v866_v63 }
  0x4a   :  { %549 = vmatpush.bf16.msrb.mxu1 %v874_v0 }
  0x4c   :  { %537 = vmatmul.bf16.vlgmr.msrb.gmra.mxu0 %v170_v1 }
  0x4d   :  { %550 = vmatmul.bf16.vlgmr.msrb.gmra.mxu1 %v171_v2 }
  0xa9   :  { %v486_v3 = vpop.f32.mrf.mxu0 }
  0xaa   :  { %v499_v4 = vpop.f32.mrf.mxu1  ;;  %v487_v10 = vadd.f32 %v890_v9, %v486_v3 }
  0xac   :  { %v500_v13 = vadd.f32 %v499_v4, %v487_v10 }
  0xb1   :  { %v488_v5 = vpop.f32.mrf.mxu0  ;;  %v512_v7 = vpop.f32.mrf.mxu2 }
  0xb2   :  { %v501_v6 = vpop.f32.mrf.mxu1  ;;  %v525_v8 = vpop.f32.mrf.mxu3  ;;  %v513_v14 = vadd.f32 %v512_v7, %v500_v13 }
  0xb4   :  { %v526_v17 = vadd.f32 %v525_v8, %v513_v14 }
  0xb9   :  { %v514_v11 = vpop.f32.mrf.mxu2 }
  0xba   :  { %v527_v12 = vpop.f32.mrf.mxu3 }
  0xc1   :  { %v564_v15 = vpop.f32.mrf.mxu2 }
  0xc9   :  { %v538_v18 = vpop.f32.mrf.mxu0  ;;  %v566_v23 = vpop.f32.mrf.mxu2 }
  0xca   :  { %v551_v19 = vpop.f32.mrf.mxu1  ;;  %v539_v21 = vadd.f32 %v538_v18, %v526_v17 }
  0xcc   :  { %v552_v22 = vadd.f32 %v551_v19, %v539_v21 }
  0xce   :  { %v565_v24 = vadd.f32 %v564_v15, %v552_v22 }
  0xd0   :  { %v577_v25 = vsel %vm574_vm1, %v565_v24, 0.0  ;;  %568 = vst [vmem:[#allocation7] sm:$0xff] %v565_v24 }
  0xd1   :  { %v578_v26 = vrot.slane %v577_v25, 4  ;;  %v584_v27 = vmul.f32 %v577_v25, %v577_v25  ;;  %v540_v28 = vpop.f32.mrf.mxu0  ;;  %613 = dma.vmem_to_hbm [thread:$0]  %s609_s28, 128, %s611_s5, [#allocation4]  }
  0xd2   :  { %v553_v29 = vpop.f32.mrf.mxu1 }
  0xd3   :  { %v579_v30 = vadd.f32 %v578_v26, %v577_v25  ;;  %v585_v31 = vrot.slane %v584_v27, 4 }
  0xd5   :  { %v580_v32 = vrot.slane %v579_v30, 2  ;;  %v586_v33 = vadd.f32 %v585_v31, %v584_v27 }
  0xd7   :  { %v581_v34 = vadd.f32 %v580_v32, %v579_v30  ;;  %v587_v35 = vrot.slane %v586_v33, 2 }
  0xd9   :  { %v582_v36 = vrot.slane %v581_v34, 1  ;;  %v588_v37 = vadd.f32 %v587_v35, %v586_v33 }
  0xdb   :  { %v589_v38 = vrot.slane %v588_v37, 1  ;;  %v583_v39 = vadd.f32 %v582_v36, %v581_v34 }
  0xdd   :  { %v590_v40 = vadd.f32 %v589_v38, %v588_v37 }
  0xdf   :  { %v592_v41 = vsel %vm591_vm2, %v583_v39, %v590_v40 }
  0xe0   :  { %v594_v42 = vsel %vm593_vm3, %v592_v41, 0.0 }
  0xe1   :  { %602 = vst [vmem:[#allocation8] sm:$0xff] %v594_v42 }
  0xe2   :  { %624 = dma.vmem_to_hbm [thread:$0]  %s620_s3, 128, %s622_s8, [#allocation9]  }
  0xe3   :  { %991 = dma.done.wait [#allocation4], 128  }
  0xe4   :  { %992 = vsyncadd [#allocation4], 4294967168 }
  0xe5   :  { %993 = dma.done.wait [#allocation9], 128  }
  0xe6   :  { %994 = vsyncadd [#allocation9], 4294967168 }
  0xe7   :  { %633 = vsyncpa [#allocation3], 1 }
  0xe8   :  { %634 = vsyncpa [#allocation6], 1 }
  0xe9   :  { %635 = vsyncpa [#allocation4], 1 }
  0xea   :  { %636 = vsyncpa [#allocation9], 1 }

</bundles_post_ra>
